<compile_context>
chip_gen: v7x
topology: tpu7x:2x2x1
jax: 0.10.0
libtpu: 0.0.40
codegen_flags: <defaults>
</compile_context>

<pallas_src>
import functools

import jax
import jax.numpy as jnp
from jax.experimental import pallas as pl
from jax.experimental.pallas import tpu as pltpu

_SUBLANE = 8  # f32 sublane width


def _round_up(n, m):
    return (n + m - 1) // m * m


def _mlp_kernel(x_ref, w1_ref, b1_ref, w2_ref, b2_ref, o_ref):
    # Fused two-layer MLP on VMEM-resident tiles.
    # Weights arrive as bf16 (full-rate MXU, halved DMA bytes); both dots
    # accumulate in f32.  Bias adds / ReLU stay in f32 (v5e has no bf16 VPU).
    x = x_ref[...].astype(w1_ref.dtype)                         # bf16 MXU operand
    h = jnp.dot(x, w1_ref[...], preferred_element_type=jnp.float32)
    h = jnp.maximum(h + b1_ref[...], 0.0)                       # f32 bias + ReLU
    y = jnp.dot(h.astype(w2_ref.dtype), w2_ref[...],
                preferred_element_type=jnp.float32)
    o_ref[...] = (y + b2_ref[...]).astype(o_ref.dtype)


def prepare_params(w1, b1, w2, b2):
    """Pack params for the kernel.

    w1: (I, H), b1: (H,), w2: (H, O), b2: (O,)  — (in, out) layout, i.e. the
    transpose of PyTorch nn.Linear's (out, in) storage.

    Weights are cast to bf16 once (MXU operands); biases stay f32 as (1, N)
    rows so the in-kernel broadcast-add is a plain f32 VPU op.
    """
    return (w1.astype(jnp.bfloat16),
            b1.reshape(1, -1).astype(jnp.float32),
            w2.astype(jnp.bfloat16),
            b2.reshape(1, -1).astype(jnp.float32))


@functools.partial(jax.jit, static_argnames=("batch_tile",))
def mlp_forward(x, w1, b1, w2, b2, *, batch_tile=1024):
    """x: (B, I) f32; params from prepare_params. Returns (B, O) f32."""
    B, I = x.shape
    H = w1.shape[1]
    O = w2.shape[1]

    def cost(batch):
        return pl.CostEstimate(
            flops=2 * batch * I * H + 2 * batch * H * O,
            transcendentals=0,
            bytes_accessed=(batch * I * 4 + I * H * 2 + H * 4
                            + H * O * 2 + O * 4 + batch * O * 4))

    # >= 2 grid steps keeps both v7x TensorCores busy on the "parallel" axis;
    # below the threshold the whole (tiny) batch fits in VMEM gridlessly.
    use_grid = B >= 2 * batch_tile

    if use_grid:
        Bp = _round_up(B, batch_tile)
        xp = jnp.pad(x, ((0, Bp - B), (0, 0))) if Bp != B else x  # single pad op
        out = pl.pallas_call(
            _mlp_kernel,
            out_shape=jax.ShapeDtypeStruct((Bp, O), jnp.float32),
            grid=(Bp // batch_tile,),
            in_specs=[
                # x tile: last dim == full array dim (16) -> legal, no padding.
                pl.BlockSpec((batch_tile, I), lambda i: (i, 0)),
                # Constant-index weight/bias blocks: not re-fetched across steps.
                pl.BlockSpec((I, H), lambda i: (0, 0)),
                pl.BlockSpec((1, H), lambda i: (0, 0)),
                pl.BlockSpec((H, O), lambda i: (0, 0)),
                pl.BlockSpec((1, O), lambda i: (0, 0)),
            ],
            # Compact output: last dim == full array dim (4) -> masked vst, but
            # 32x fewer HBM bytes than a 128-lane padded slab + slice kernel.
            out_specs=pl.BlockSpec((batch_tile, O), lambda i: (i, 0)),
            compiler_params=pltpu.CompilerParams(
                dimension_semantics=("parallel",)),
            cost_estimate=cost(Bp),
        )(xp, w1, b1, w2, b2)
        return out[:B] if Bp != B else out

    # Latency path: no grid, no padding, no post-slice — one dispatch, all
    # operands resident in VMEM (worst case ~128 KB of x at B = 2*batch_tile-1).
    return pl.pallas_call(
        _mlp_kernel,
        out_shape=jax.ShapeDtypeStruct((B, O), jnp.float32),
        in_specs=[pl.BlockSpec(memory_space=pltpu.VMEM)] * 5,
        out_specs=pl.BlockSpec(memory_space=pltpu.VMEM),
        cost_estimate=cost(max(B, _SUBLANE)),
    )(x, w1, b1, w2, b2)


def init_params(key, input_size, hidden_size, output_size):
    """Deterministic init mimicking nn.Linear default (uniform +-1/sqrt(fan_in))."""
    k1, k2, k3, k4 = jax.random.split(key, 4)
    lim1 = 1.0 / jnp.sqrt(jnp.float32(input_size))
    lim2 = 1.0 / jnp.sqrt(jnp.float32(hidden_size))
    # PyTorch weight shape is (out, in); store transposed (in, out) for the kernel.
    w1 = jax.random.uniform(k1, (input_size, hidden_size), jnp.float32, -lim1, lim1)
    b1 = jax.random.uniform(k2, (hidden_size,), jnp.float32, -lim1, lim1)
    w2 = jax.random.uniform(k3, (hidden_size, output_size), jnp.float32, -lim2, lim2)
    b2 = jax.random.uniform(k4, (output_size,), jnp.float32, -lim2, lim2)
    return w1, b1, w2, b2


if __name__ == "__main__":
    # Snake-game-style sizes: input=16, hidden=32, output=4.
    input_size, hidden_size, output_size = 16, 32, 4

    key = jax.random.PRNGKey(0)
    kx, kb, kp = jax.random.split(key, 3)
    w1, b1, w2, b2 = init_params(kp, input_size, hidden_size, output_size)
    w1q, b1r, w2q, b2r = prepare_params(w1, b1, w2, b2)

    def ref_f32(x):
        # Pure f32 reference (module semantics).
        return jnp.maximum(x @ w1 + b1, 0.0) @ w2 + b2

    def ref_bf16(x):
        # Matched-precision reference (bf16 MXU operands, f32 accumulation).
        h = jnp.dot(x.astype(jnp.bfloat16), w1q,
                    preferred_element_type=jnp.float32) + b1
        h = jnp.maximum(h, 0.0)
        return jnp.dot(h.astype(jnp.bfloat16), w2q,
                       preferred_element_type=jnp.float32) + b2

    # Small-batch (gridless, latency) path.
    x_small = jax.random.normal(kx, (8, input_size), jnp.float32)
    out_small = jax.block_until_ready(mlp_forward(x_small, w1q, b1r, w2q, b2r))
    assert out_small.shape == (8, output_size)
    assert jnp.allclose(out_small, ref_bf16(x_small), atol=1e-4, rtol=1e-4), \
        "small-batch mismatch vs matched-precision reference"
    assert jnp.allclose(out_small, ref_f32(x_small), atol=1e-1, rtol=1e-1), \
        "small-batch mismatch vs f32 reference"

    # Batched (parallel-grid, throughput) path: 4 grid steps at batch_tile=1024.
    x_big = jax.random.normal(kb, (4096, input_size), jnp.float32)
    out_big = jax.block_until_ready(mlp_forward(x_big, w1q, b1r, w2q, b2r))
    assert out_big.shape == (4096, output_size)
    assert jnp.allclose(out_big, ref_bf16(x_big), atol=1e-4, rtol=1e-4), \
        "batched mismatch vs matched-precision reference"
    assert jnp.allclose(out_big, ref_f32(x_big), atol=1e-1, rtol=1e-1), \
        "batched mismatch vs f32 reference"

    print("KERNEL_OK")
</pallas_src>

<mosaic_0001>
module attributes {stable_mosaic.version = 11 : i64} {
  func.func @_mlp_kernel(%arg0: memref<8x16xf32, #tpu.memory_space<vmem>>, %arg1: memref<16x32xbf16, #tpu.memory_space<vmem>>, %arg2: memref<1x32xf32, #tpu.memory_space<vmem>>, %arg3: memref<32x4xbf16, #tpu.memory_space<vmem>>, %arg4: memref<1x4xf32, #tpu.memory_space<vmem>>, %arg5: memref<8x4xf32, #tpu.memory_space<vmem>>) attributes {dimension_semantics = [], scalar_prefetch = 0 : i64, scratch_operands = 0 : i64, tpu.core_type = #tpu.core_type<tc>} {
    %c0 = arith.constant 0 : index
    %c0_0 = arith.constant 0 : index
    %0 = vector.load %arg0[%c0, %c0_0] : memref<8x16xf32, #tpu.memory_space<vmem>>, vector<8x16xf32>
    %1 = arith.truncf %0 : vector<8x16xf32> to vector<8x16xbf16>
    %c0_1 = arith.constant 0 : index
    %c0_2 = arith.constant 0 : index
    %2 = vector.load %arg1[%c0_1, %c0_2] : memref<16x32xbf16, #tpu.memory_space<vmem>>, vector<16x32xbf16>
    %cst = arith.constant dense<0.000000e+00> : vector<8x32xf32>
    %3 = tpu.matmul %1, %2, %cst {dimension_numbers = #tpu.dot_dimension_numbers<[1], [0], [0], [1], [0, 0, 1, 1], [], []>} : vector<8x16xbf16>, vector<16x32xbf16>, vector<8x32xf32> -> vector<8x32xf32>
    %c0_3 = arith.constant 0 : index
    %c0_4 = arith.constant 0 : index
    %4 = vector.load %arg2[%c0_3, %c0_4] : memref<1x32xf32, #tpu.memory_space<vmem>>, vector<1x32xf32>
    %5 = vector.broadcast %4 : vector<1x32xf32> to vector<8x32xf32>
    %6 = arith.addf %3, %5 : vector<8x32xf32>
    %cst_5 = arith.constant 0.000000e+00 : f32
    %7 = vector.broadcast %cst_5 : f32 to vector<8x32xf32>
    %8 = arith.maximumf %6, %7 : vector<8x32xf32>
    %9 = arith.truncf %8 : vector<8x32xf32> to vector<8x32xbf16>
    %c0_6 = arith.constant 0 : index
    %c0_7 = arith.constant 0 : index
    %10 = vector.load %arg3[%c0_6, %c0_7] : memref<32x4xbf16, #tpu.memory_space<vmem>>, vector<32x4xbf16>
    %cst_8 = arith.constant dense<0.000000e+00> : vector<8x4xf32>
    %11 = tpu.matmul %9, %10, %cst_8 {dimension_numbers = #tpu.dot_dimension_numbers<[1], [0], [0], [1], [0, 0, 1, 1], [], []>} : vector<8x32xbf16>, vector<32x4xbf16>, vector<8x4xf32> -> vector<8x4xf32>
    %c0_9 = arith.constant 0 : index
    %c0_10 = arith.constant 0 : index
    %12 = vector.load %arg4[%c0_9, %c0_10] : memref<1x4xf32, #tpu.memory_space<vmem>>, vector<1x4xf32>
    %13 = vector.broadcast %12 : vector<1x4xf32> to vector<8x4xf32>
    %14 = arith.addf %11, %13 : vector<8x4xf32>
    %c0_11 = arith.constant 0 : index
    %c0_12 = arith.constant 0 : index
    %15 = vector.load %arg5[%c0_11, %c0_12] : memref<8x4xf32, #tpu.memory_space<vmem>>, vector<8x4xf32>
    tpu.vector_store %arg5[%c0_11, %c0_12], %14 {strides = array<i32>} : memref<8x4xf32, #tpu.memory_space<vmem>>, vector<8x4xf32>,
    return
  }
}

</mosaic_0001>

<bundles_post_ra>
// kernel: mlp_forward.1
= control target key start
LH: loop header
LB: loop body
LE: loop exit
PB: predicated region body
PF: predicated region fallthrough
CT: control target
= control target key end

     0   :  { %v188_v0 = vmov 0.0   ;;  %vm189_vm0 = vmmov 0   ;;  %vm38_vm1 = vcmask 130048   ;;  %vm107_vm2 = vcmask 261120   ;;  %s241_s1 = inlined_call_operand.vmem [shape: bf16[16,32], index: 1, kind: input, shape index: {}]   ;;  %s242_s0 = inlined_call_operand.vmem [shape: f32[8,16], index: 0, kind: input, shape index: {}]   ;;  %s243_s3 = inlined_call_operand.vmem [shape: bf16[32,4], index: 3, kind: input, shape index: {}]   ;;  %s244_s2 = inlined_call_operand.vmem [shape: f32[1,32], index: 2, kind: input, shape index: {}]   ;;  %s245_s4 = inlined_call_operand.vmem [shape: f32[1,4], index: 4, kind: input, shape index: {}]   ;;  %s246_s5 = inlined_call_operand.vmem [shape: f32[8,4], index: 5, kind: output, shape index: {}]  }
   0x1   :  { %169 = vmatprep.subr.bf16.mxu0 %v188_v0  ;;  %v185_v1 = vld [vmem:[%s241_s1] sm:$0xff]   ;;  %171 = vmatprep.mubr.msk.bf16.mxu0 %vm189_vm0, %v188_v0  ;;  %v187_v5 = vld [vmem:[%s243_s3 + $0x8] sm:$0xff]   ;;  %vm151_vm3 = vcmask 31744  }
   0x2   :  { %v21_v2 = vld [vmem:[%s242_s0] sm:$0xff]  ;;  %175 = vmatprep.subr.bf16.mxu1 %v188_v0  ;;  %179 = vmatprep.mubr.msk.bf16.mxu1 %vm189_vm0, %v188_v0 }
   0x3   :  { %170 = vmatpush3.bf16.msra.mxu0 %v185_v1  ;;  %v22_v3 = vpack.c.bf16 %v21_v2, %v21_v2  ;;  %v186_v4 = vld [vmem:[%s243_s3] sm:$0xff]  }
   0x4   :  { %176 = vmatpush3.bf16.msra.mxu1 %v186_v4  ;;  %v157_v6 = vld [vmem:[%s244_s2] ss:$0 sm:$0xff] }
   0x5   :  { %177 = vmatprep.subr.bf16.mxu1 %v188_v0  ;;  %v160_v14 = vld [vmem:[%s245_s4] ss:$0 sm:$0xff] }
   0x6   :  { %172 = vmatmul.mubr.msk.bf16.vlgmr.msra.gmra.mrb[0].mxu0 %vm38_vm1, %v22_v3 }
   0x8   :  { %178 = vmatpush3.bf16.msra.mxu1 %v187_v5 }
  0xd9   :  { %v76_v7 = vpop.f32.mrb[0].mxu0 }
  0xda   :  { %v77_v8 = vadd.f32 %v157_v6, %v76_v7  ;;  %v173_v9 = vpop.f32.mrb[1].mxu0 }
  0xdb   :  { %v79_v10 = vpop.f32.mrb[2].mxu0 }
  0xdc   :  { %v82_v11 = vmax.f32 %v77_v8, 0.0  ;;  %v174_v12 = vpop.f32.mrb[3].mxu0 }
  0xde   :  { %v83_v13 = vpack.c.bf16 %v82_v11, %v82_v11 }
  0xe0   :  { %180 = vmatmul.mubr.msk.bf16.vlgmr.msra.gmra.mrb[0].mxu1 %vm107_vm2, %v83_v13 }
 0x1b3   :  { %v145_v15 = vpop.f32.mrb[0].mxu1 }
 0x1b4   :  { %v146_v16 = vadd.f32 %v160_v14, %v145_v15  ;;  %v181_v17 = vpop.f32.mrb[1].mxu1 }
 0x1b5   :  { %v148_v18 = vpop.f32.mrb[2].mxu1 }
 0x1b6   :  { %152 = vst.msk [vmem:[%s246_s5] sm:$0xff] %vm151_vm3, %v146_v16  ;;  %v182_v19 = vpop.f32.mrb[3].mxu1 }

</bundles_post_ra>
